<compile_context>
chip_gen: v5e
topology: v5e:2x2
jax: 0.10.0
libtpu: 0.0.40
codegen_flags: <defaults>
</compile_context>

<pallas_src>
import functools

import jax
import jax.numpy as jnp
import numpy as np
from jax.experimental import pallas as pl
from jax.experimental.pallas import tpu as pltpu

MATMUL_DTYPE = jnp.bfloat16      # MXU operand dtype (accumulation is fp32)


def _vmem_limit_bytes():
    """Generation-aware VMEM limit: ~3/4 of physical (v5e/v6e: 128 MiB,
    v7x: 64 MiB), capped at 96 MiB."""
    cap = 64 << 20
    try:
        info = pltpu.get_tpu_info()
        cap = int(getattr(info, "vmem_capacity_bytes", cap))
    except Exception:
        pass
    if cap < (32 << 20) or cap > (256 << 20):
        cap = 64 << 20
    return min((cap * 3) // 4, 96 << 20)


# ------------------------------ in-kernel helpers ----------------------------

def _gn_apply_silu(v, scale, shift):
    """v: (N, C) fp32; scale/shift: (1, C) fp32 per-batch GN affine.
    SiLU: exp and the (approx) reciprocal both go to the EUP slot."""
    y = v * scale + shift
    return y * pl.reciprocal(1.0 + jnp.exp(-y), approx=True)


def _fill_padded(pad_ref, x_ref, xt_ref, xb_ref, scale_ref, shift_ref):
    """GroupNorm-apply + SiLU the row tile (+ halo rows) into the bf16
    zero-bordered scratch used by the 3x3 conv.  Only the 1-wide border is
    zeroed; the interior and halo rows are fully overwritten every tile."""
    r = pl.program_id(1)
    n_r = pl.num_programs(1)
    _, th, w, c = x_ref.shape
    scale = scale_ref[0]                            # (1, C)
    shift = shift_ref[0]                            # (1, C)

    # TODO(synk): interior starts at W-offset 1 (sublane-unaligned); a fully
    # 8-aligned pad layout would avoid masked stores but complicates the taps.
    zcol = jnp.zeros((th + 2, 1, c), pad_ref.dtype)
    pad_ref[:, 0:1, :] = zcol                       # left halo column
    pad_ref[:, w + 1:w + 2, :] = zcol               # right halo column

    yc = _gn_apply_silu(x_ref[0].reshape(th * w, c), scale, shift)
    pad_ref[1:th + 1, 1:w + 1, :] = yc.reshape(th, w, c).astype(pad_ref.dtype)

    @pl.when(r > 0)                                 # top halo row
    def _():
        yt = _gn_apply_silu(xt_ref[0, 0], scale, shift)
        pad_ref[0, 1:w + 1, :] = yt.astype(pad_ref.dtype)

    @pl.when(r == 0)                                # image top boundary
    def _():
        pad_ref[0:1, :, :] = jnp.zeros((1, w + 2, c), pad_ref.dtype)

    @pl.when(r < n_r - 1)                           # bottom halo row
    def _():
        yb = _gn_apply_silu(xb_ref[0, 0], scale, shift)
        pad_ref[th + 1, 1:w + 1, :] = yb.astype(pad_ref.dtype)

    @pl.when(r == n_r - 1)                          # image bottom boundary
    def _():
        pad_ref[th + 1:th + 2, :, :] = jnp.zeros((1, w + 2, c), pad_ref.dtype)


def _conv3x3_acc(pad_ref, w_ref):
    """3x3 conv with the kw taps folded into the contraction dim:
    3 matmuls with K = 3*Cin instead of 9 with K = Cin.
    pad_ref: (TH+2, W+2, Cin) bf16 scratch; w_ref: (3, 3*Cin, Cout) bf16."""
    th = pad_ref.shape[0] - 2
    w = pad_ref.shape[1] - 2
    cin = pad_ref.shape[2]
    cout = w_ref.shape[2]
    acc = jnp.zeros((th * w, cout), jnp.float32)
    for kh in range(3):
        patch = jnp.concatenate(
            [pad_ref[kh:kh + th, 0:w, :],
             pad_ref[kh:kh + th, 1:w + 1, :],
             pad_ref[kh:kh + th, 2:w + 2, :]],
            axis=-1).reshape(th * w, 3 * cin)
        acc = acc + jnp.dot(patch, w_ref[kh],
                            preferred_element_type=jnp.float32)
    return acc


# ---------------------------------- kernels ----------------------------------

def gn_stats_kernel(x_ref, g_ref, b_ref, m_ref, mt_ref, scale_ref, shift_ref,
                    s1_ref, s2_ref, *, eps, inv_n):
    """Accumulate per-channel sum / sum-of-squares over row tiles; at the last
    tile reduce per group (tiny one-hot matmul) and emit the per-channel
    affine (scale, shift) so GN(x) = x*scale + shift."""
    r = pl.program_id(1)

    @pl.when(r == 0)
    def _():
        s1_ref[...] = jnp.zeros_like(s1_ref)
        s2_ref[...] = jnp.zeros_like(s2_ref)

    c = x_ref.shape[-1]
    x = x_ref[0].reshape(-1, c)
    s1_ref[...] += jnp.sum(x, axis=0, keepdims=True)                # (1, C)
    s2_ref[...] += jnp.sum(x * x, axis=0, keepdims=True)            # (1, C)

    @pl.when(r == pl.num_programs(1) - 1)
    def _():
        sum_g = jnp.dot(s1_ref[...], m_ref[...], preferred_element_type=jnp.float32)
        sq_g = jnp.dot(s2_ref[...], m_ref[...], preferred_element_type=jnp.float32)
        mean_g = sum_g * inv_n                                      # (1, G)
        # TODO(synk): one-pass E[x^2]-m^2 can cancel for huge activations.
        var_g = sq_g * inv_n - mean_g * mean_g
        rstd_g = jax.lax.rsqrt(var_g + eps)
        mean_c = jnp.dot(mean_g, mt_ref[...], preferred_element_type=jnp.float32)
        rstd_c = jnp.dot(rstd_g, mt_ref[...], preferred_element_type=jnp.float32)
        scale_c = rstd_c * g_ref[...]                               # (1, C)
        scale_ref[0] = scale_c
        shift_ref[0] = b_ref[...] - mean_c * scale_c


def gn_conv1_kernel(x_ref, xt_ref, xb_ref, scale_ref, shift_ref,
                    w_ref, bt_ref, g2_ref, b2_ref, m2_ref, m2t_ref,
                    o_ref, scale2_ref, shift2_ref,
                    pad_ref, s1_ref, s2_ref, *, eps, inv_n):
    """GN1-apply + SiLU + 3x3 conv + (bias + time-embedding), with the GN2
    statistics pass fused (per-channel sums accumulated over row tiles;
    scale2/shift2 emitted at the last row tile) -> no HBM re-read of h."""
    r = pl.program_id(1)

    @pl.when(r == 0)
    def _():
        s1_ref[...] = jnp.zeros_like(s1_ref)
        s2_ref[...] = jnp.zeros_like(s2_ref)

    _, th, w, _ = x_ref.shape
    cout = o_ref.shape[-1]
    _fill_padded(pad_ref, x_ref, xt_ref, xb_ref, scale_ref, shift_ref)
    h = _conv3x3_acc(pad_ref, w_ref) + bt_ref[0]          # (th*W, Cout) fp32
    o_ref[0] = h.reshape(th, w, cout)

    s1_ref[...] += jnp.sum(h, axis=0, keepdims=True)
    s2_ref[...] += jnp.sum(h * h, axis=0, keepdims=True)

    @pl.when(r == pl.num_programs(1) - 1)
    def _():
        sum_g = jnp.dot(s1_ref[...], m2_ref[...], preferred_element_type=jnp.float32)
        sq_g = jnp.dot(s2_ref[...], m2_ref[...], preferred_element_type=jnp.float32)
        mean_g = sum_g * inv_n
        var_g = sq_g * inv_n - mean_g * mean_g
        rstd_g = jax.lax.rsqrt(var_g + eps)
        mean_c = jnp.dot(mean_g, m2t_ref[...], preferred_element_type=jnp.float32)
        rstd_c = jnp.dot(rstd_g, m2t_ref[...], preferred_element_type=jnp.float32)
        scale_c = rstd_c * g2_ref[...]
        scale2_ref[0] = scale_c
        shift2_ref[0] = b2_ref[...] - mean_c * scale_c


def gn_conv2_shortcut_kernel(h_ref, ht_ref, hb_ref, scale_ref, shift_ref,
                             w_ref, b_ref, x_ref, sw_ref, o_ref, pad_ref):
    """GN2-apply + SiLU + 3x3 conv + (bias + shortcut bias)
    + fused 1x1-conv shortcut of x."""
    _, th, w, _ = h_ref.shape
    cout = o_ref.shape[-1]
    cin_sc = x_ref.shape[-1]
    _fill_padded(pad_ref, h_ref, ht_ref, hb_ref, scale_ref, shift_ref)
    acc = _conv3x3_acc(pad_ref, w_ref) + b_ref[...]
    xs = x_ref[0].reshape(th * w, cin_sc).astype(sw_ref.dtype)
    acc = acc + jnp.dot(xs, sw_ref[...], preferred_element_type=jnp.float32)
    o_ref[0] = acc.reshape(th, w, cout)


def linear_kernel(t_ref, w_ref, b_ref, o_ref):
    o_ref[...] = jnp.dot(t_ref[...], w_ref[...],
                         preferred_element_type=jnp.float32) + b_ref[...]


# --------------------------------- wrappers ----------------------------------

def _group_one_hot(c, g):
    gidx = jnp.arange(c) // (c // g)
    return (gidx[:, None] == jnp.arange(g)[None, :]).astype(jnp.float32)


def _halo_specs(H, W, C, row_tile):
    """Center row-tile block plus clamped single-row halo blocks (no jnp.pad)."""
    th = row_tile
    center = pl.BlockSpec((1, th, W, C), lambda b, r: (b, r, 0, 0))
    top = pl.BlockSpec((1, 1, W, C),
                       lambda b, r: (b, jnp.maximum(r * th - 1, 0), 0, 0))
    bot = pl.BlockSpec((1, 1, W, C),
                       lambda b, r: (b, jnp.minimum((r + 1) * th, H - 1), 0, 0))
    return center, top, bot


def group_norm_affine(x, gamma, beta, n_group, row_tile, vmem_limit, eps=1e-5):
    """Per-(batch, channel) scale/shift so that GN(x) = x * scale + shift."""
    B, H, W, C = x.shape
    G = n_group
    M = _group_one_hot(C, G)
    n_r = H // row_tile
    kernel = functools.partial(gn_stats_kernel, eps=eps,
                               inv_n=1.0 / (H * W * (C // G)))
    return pl.pallas_call(
        kernel,
        out_shape=(jax.ShapeDtypeStruct((B, 1, C), jnp.float32),
                   jax.ShapeDtypeStruct((B, 1, C), jnp.float32)),
        grid=(B, n_r),
        in_specs=[
            pl.BlockSpec((1, row_tile, W, C), lambda b, r: (b, r, 0, 0)),
            pl.BlockSpec((1, C), lambda b, r: (0, 0)),
            pl.BlockSpec((1, C), lambda b, r: (0, 0)),
            pl.BlockSpec((C, G), lambda b, r: (0, 0)),
            pl.BlockSpec((G, C), lambda b, r: (0, 0)),
        ],
        out_specs=(pl.BlockSpec((1, 1, C), lambda b, r: (b, 0, 0)),
                   pl.BlockSpec((1, 1, C), lambda b, r: (b, 0, 0))),
        scratch_shapes=[pltpu.VMEM((1, C), jnp.float32),
                        pltpu.VMEM((1, C), jnp.float32)],
        compiler_params=pltpu.CompilerParams(
            dimension_semantics=("parallel", "arbitrary"),
            vmem_limit_bytes=vmem_limit),
    )(x, gamma.reshape(1, C), beta.reshape(1, C), M, M.T)


def gn_silu_conv3x3_temb_gn2stats(x, scale1, shift1, w, bias_temb,
                                  gn2_g, gn2_b, n_group, row_tile, vmem_limit,
                                  eps=1e-5):
    B, H, W, Cin = x.shape
    Cout = w.shape[-1]
    G = n_group
    th = row_tile
    n_r = H // th
    w3 = w.reshape(3, 3 * Cin, Cout).astype(MATMUL_DTYPE)   # kw folded into K
    M2 = _group_one_hot(Cout, G)
    center, top, bot = _halo_specs(H, W, Cin, th)
    kernel = functools.partial(gn_conv1_kernel, eps=eps,
                               inv_n=1.0 / (H * W * (Cout // G)))
    cost = pl.CostEstimate(
        flops=int(2 * B * H * W * 9 * Cin * Cout),
        transcendentals=int(B * H * W * Cin),
        bytes_accessed=int(4 * B * H * W * (Cin + Cout) + 2 * 9 * Cin * Cout))
    return pl.pallas_call(
        kernel,
        out_shape=(jax.ShapeDtypeStruct((B, H, W, Cout), jnp.float32),
                   jax.ShapeDtypeStruct((B, 1, Cout), jnp.float32),
                   jax.ShapeDtypeStruct((B, 1, Cout), jnp.float32)),
        grid=(B, n_r),
        in_specs=[
            center, top, bot,
            pl.BlockSpec((1, 1, Cin), lambda b, r: (b, 0, 0)),      # scale1
            pl.BlockSpec((1, 1, Cin), lambda b, r: (b, 0, 0)),      # shift1
            pl.BlockSpec((3, 3 * Cin, Cout), lambda b, r: (0, 0, 0)),
            pl.BlockSpec((1, 1, Cout), lambda b, r: (b, 0, 0)),     # bias+temb
            pl.BlockSpec((1, Cout), lambda b, r: (0, 0)),           # gn2 gamma
            pl.BlockSpec((1, Cout), lambda b, r: (0, 0)),           # gn2 beta
            pl.BlockSpec((Cout, G), lambda b, r: (0, 0)),           # one-hot
            pl.BlockSpec((G, Cout), lambda b, r: (0, 0)),           # one-hot^T
        ],
        out_specs=(pl.BlockSpec((1, th, W, Cout), lambda b, r: (b, r, 0, 0)),
                   pl.BlockSpec((1, 1, Cout), lambda b, r: (b, 0, 0)),
                   pl.BlockSpec((1, 1, Cout), lambda b, r: (b, 0, 0))),
        scratch_shapes=[pltpu.VMEM((th + 2, W + 2, Cin), MATMUL_DTYPE),
                        pltpu.VMEM((1, Cout), jnp.float32),
                        pltpu.VMEM((1, Cout), jnp.float32)],
        compiler_params=pltpu.CompilerParams(
            # batch stays "parallel" (v7x 2-TC scaling); rows must be
            # "arbitrary" because GN2 statistics accumulate across row tiles.
            dimension_semantics=("parallel", "arbitrary"),
            vmem_limit_bytes=vmem_limit),
        cost_estimate=cost,
    )(x, x, x, scale1, shift1, w3, bias_temb.reshape(B, 1, Cout),
      gn2_g.reshape(1, Cout), gn2_b.reshape(1, Cout), M2, M2.T)


def gn_silu_conv3x3_shortcut(h, scale2, shift2, w, b_total, x, sc_w,
                             row_tile, vmem_limit):
    B, H, W, Ch = h.shape
    Cout = w.shape[-1]
    Cin_sc = x.shape[-1]
    th = row_tile
    n_r = H // th
    w3 = w.reshape(3, 3 * Ch, Cout).astype(MATMUL_DTYPE)
    sw = sc_w.astype(MATMUL_DTYPE)
    center, top, bot = _halo_specs(H, W, Ch, th)
    cost = pl.CostEstimate(
        flops=int(2 * B * H * W * (9 * Ch + Cin_sc) * Cout),
        transcendentals=int(B * H * W * Ch),
        bytes_accessed=int(4 * B * H * W * (Ch + Cin_sc + Cout)
                           + 2 * (9 * Ch + Cin_sc) * Cout))
    return pl.pallas_call(
        gn_conv2_shortcut_kernel,
        out_shape=jax.ShapeDtypeStruct((B, H, W, Cout), jnp.float32),
        grid=(B, n_r),
        in_specs=[
            center, top, bot,
            pl.BlockSpec((1, 1, Ch), lambda b, r: (b, 0, 0)),       # scale2
            pl.BlockSpec((1, 1, Ch), lambda b, r: (b, 0, 0)),       # shift2
            pl.BlockSpec((3, 3 * Ch, Cout), lambda b, r: (0, 0, 0)),
            pl.BlockSpec((1, Cout), lambda b, r: (0, 0)),           # bias+sc_b
            pl.BlockSpec((1, th, W, Cin_sc), lambda b, r: (b, r, 0, 0)),
            pl.BlockSpec((Cin_sc, Cout), lambda b, r: (0, 0)),
        ],
        out_specs=pl.BlockSpec((1, th, W, Cout), lambda b, r: (b, r, 0, 0)),
        scratch_shapes=[pltpu.VMEM((th + 2, W + 2, Ch), MATMUL_DTYPE)],
        compiler_params=pltpu.CompilerParams(
            dimension_semantics=("parallel", "parallel"),
            vmem_limit_bytes=vmem_limit),
        cost_estimate=cost,
    )(h, h, h, scale2, shift2, w3, b_total.reshape(1, Cout), x, sw)


def linear(t, w, b):
    B = t.shape[0]
    Cout = w.shape[-1]
    return pl.pallas_call(
        linear_kernel,
        out_shape=jax.ShapeDtypeStruct((B, Cout), jnp.float32),
    )(t, w, b.reshape(1, Cout))


# ----------------------------- UpBlock forward --------------------------------

def _pick_row_tile(H, W, c_in, c_out, c_sc, budget_bytes):
    """Largest divisor of H whose per-tile working set (double-buffered I/O,
    halo rows, shortcut tile, bf16 padded scratch + folded patches, fp32
    accumulator and double-buffered weights) fits the VMEM budget."""
    c_act = max(c_in, c_out)
    for th in range(H, 0, -1):
        if H % th:
            continue
        per_tile = (
            2 * th * W * c_act * 4              # input row tile   (x2 pipeline)
            + 2 * 2 * W * c_act * 4             # two 1-row halos  (x2 pipeline)
            + 2 * th * W * c_out * 4            # output row tile  (x2 pipeline)
            + 2 * th * W * c_sc * 4             # conv2 shortcut x (x2 pipeline)
            + (th + 2) * (W + 2) * c_act * 2    # bf16 padded scratch
            + th * W * 3 * c_act * 2            # bf16 folded patch temp
            + th * W * c_out * 4                # fp32 conv accumulator
            + 2 * 3 * 3 * c_act * c_out * 2     # bf16 conv weights (x2 pipeline)
            + 2 * c_sc * c_out * 2)             # bf16 shortcut weights
        if per_tile <= budget_bytes:
            return th
    return 1


def up_block_forward(params, x_nchw, t, row_tile=None):
    # TODO(synk): the NCHW<->NHWC transposes are two extra HBM activation
    # passes; keep the surrounding UNet in NHWC to drop them.
    x = jnp.transpose(x_nchw, (0, 2, 3, 1)).astype(jnp.float32)   # NCHW -> NHWC
    B, H, W, Cin = x.shape
    Cout = params["conv1_w"].shape[-1]
    G = params["n_group"]
    vmem_limit = _vmem_limit_bytes()
    if row_tile is None:
        row_tile = _pick_row_tile(H, W, Cin, Cout, Cin, vmem_limit // 4)
    assert H % row_tile == 0

    # Time embedding; conv1's bias is folded into the linear bias so the conv
    # kernel adds a single per-batch (1, Cout) vector.
    bias_temb = linear(t, params["temb_w"],
                       params["temb_b"] + params["conv1_b"])      # (B, Cout)

    scale1, shift1 = group_norm_affine(x, params["gn1_g"], params["gn1_b"],
                                       G, row_tile, vmem_limit)

    # conv1 with GN1-apply/SiLU and the GN2 statistics pass fused in.
    h, scale2, shift2 = gn_silu_conv3x3_temb_gn2stats(
        x, scale1, shift1, params["conv1_w"], bias_temb,
        params["gn2_g"], params["gn2_b"], G, row_tile, vmem_limit)

    # TODO(synk): nn.Dropout is treated as eval-mode identity (no RNG masking).
    out = gn_silu_conv3x3_shortcut(
        h, scale2, shift2, params["conv2_w"],
        params["conv2_b"] + params["sc_b"],       # fold shortcut bias
        x, params["sc_w"], row_tile, vmem_limit)
    # self.attn is nn.Identity() since has_attn defaults to False.
    return jnp.transpose(out, (0, 3, 1, 2))                       # back to NCHW


def init_params(key, in_channel, out_channel, t_channel, n_group):
    c_in = in_channel + out_channel
    ks = jax.random.split(key, 12)
    s = 0.1
    f = jnp.float32
    return {
        "n_group": n_group,
        "gn1_g": 1.0 + s * jax.random.normal(ks[0], (c_in,), f),
        "gn1_b": s * jax.random.normal(ks[1], (c_in,), f),
        "conv1_w": s * jax.random.normal(ks[2], (3, 3, c_in, out_channel), f),
        "conv1_b": s * jax.random.normal(ks[3], (out_channel,), f),
        "temb_w": s * jax.random.normal(ks[4], (t_channel, out_channel), f),
        "temb_b": s * jax.random.normal(ks[5], (out_channel,), f),
        "gn2_g": 1.0 + s * jax.random.normal(ks[6], (out_channel,), f),
        "gn2_b": s * jax.random.normal(ks[7], (out_channel,), f),
        "conv2_w": s * jax.random.normal(ks[8], (3, 3, out_channel, out_channel), f),
        "conv2_b": s * jax.random.normal(ks[9], (out_channel,), f),
        "sc_w": s * jax.random.normal(ks[10], (c_in, out_channel), f),
        "sc_b": s * jax.random.normal(ks[11], (out_channel,), f),
    }


# ----------------------------- pure-JAX reference ------------------------------

def _ref_gn_swish(x, gamma, beta, G, eps=1e-5):
    B, H, W, C = x.shape
    xg = x.reshape(B, H, W, G, C // G)
    m = xg.mean(axis=(1, 2, 4), keepdims=True)
    v = ((xg - m) ** 2).mean(axis=(1, 2, 4), keepdims=True)
    y = ((xg - m) / jnp.sqrt(v + eps)).reshape(B, H, W, C) * gamma + beta
    return y * jax.nn.sigmoid(y)


def _ref_conv3x3(x, w, b):
    return jax.lax.conv_general_dilated(
        x, w, (1, 1), "SAME", dimension_numbers=("NHWC", "HWIO", "NHWC")) + b


def ref_forward(params, x_nchw, t):
    x = jnp.transpose(x_nchw, (0, 2, 3, 1))
    G = params["n_group"]
    h = _ref_gn_swish(x, params["gn1_g"], params["gn1_b"], G)
    h = _ref_conv3x3(h, params["conv1_w"], params["conv1_b"])
    h = h + (t @ params["temb_w"] + params["temb_b"])[:, None, None, :]
    h = _ref_gn_swish(h, params["gn2_g"], params["gn2_b"], G)
    sc = jnp.einsum("bhwc,cd->bhwd", x, params["sc_w"]) + params["sc_b"]
    h = _ref_conv3x3(h, params["conv2_w"], params["conv2_b"]) + sc
    return jnp.transpose(h, (0, 3, 1, 2))


# ------------------------------------ main -------------------------------------

if __name__ == "__main__":
    B = 2
    in_channel, out_channel = 4, 4
    t_channel = 8
    n_group = 4
    H = W = 16
    C = in_channel + out_channel      # UpBlock's ResBlock sees the skip-concat input

    key = jax.random.PRNGKey(0)
    kx, kt, kp = jax.random.split(key, 3)
    x = jax.random.normal(kx, (B, C, H, W), jnp.float32)   # NCHW, like PyTorch
    t = jax.random.normal(kt, (B, t_channel), jnp.float32)
    params = init_params(kp, in_channel, out_channel, t_channel, n_group)

    # row_tile=8 forces 2 row tiles so halo / stats-accumulation paths are hit.
    out = jax.block_until_ready(up_block_forward(params, x, t, row_tile=8))
    ref = jax.block_until_ready(ref_forward(params, x, t))
    # bf16 MXU operands (fp32 accumulation) -> loosened tolerance vs fp32 ref.
    np.testing.assert_allclose(np.asarray(out), np.asarray(ref),
                               atol=5e-2, rtol=5e-2)
    print("KERNEL_OK")
</pallas_src>

<mosaic_0001>
module attributes {stable_mosaic.version = 11 : i64} {
  func.func @linear_kernel(%arg0: memref<2x8xf32, #tpu.memory_space<vmem>>, %arg1: memref<8x4xf32, #tpu.memory_space<vmem>>, %arg2: memref<1x4xf32, #tpu.memory_space<vmem>>, %arg3: memref<2x4xf32, #tpu.memory_space<vmem>>) attributes {dimension_semantics = [], scalar_prefetch = 0 : i64, scratch_operands = 0 : i64, tpu.core_type = #tpu.core_type<tc>} {
    %c0 = arith.constant 0 : index
    %c0_0 = arith.constant 0 : index
    %0 = vector.load %arg0[%c0, %c0_0] : memref<2x8xf32, #tpu.memory_space<vmem>>, vector<2x8xf32>
    %c0_1 = arith.constant 0 : index
    %c0_2 = arith.constant 0 : index
    %1 = vector.load %arg1[%c0_1, %c0_2] : memref<8x4xf32, #tpu.memory_space<vmem>>, vector<8x4xf32>
    %cst = arith.constant dense<0.000000e+00> : vector<2x4xf32>
    %2 = tpu.matmul %0, %1, %cst {dimension_numbers = #tpu.dot_dimension_numbers<[1], [0], [0], [1], [0, 0, 1, 1], [], []>} : vector<2x8xf32>, vector<8x4xf32>, vector<2x4xf32> -> vector<2x4xf32>
    %c0_3 = arith.constant 0 : index
    %c0_4 = arith.constant 0 : index
    %3 = vector.load %arg2[%c0_3, %c0_4] : memref<1x4xf32, #tpu.memory_space<vmem>>, vector<1x4xf32>
    %4 = vector.broadcast %3 : vector<1x4xf32> to vector<2x4xf32>
    %5 = arith.addf %2, %4 : vector<2x4xf32>
    %c0_5 = arith.constant 0 : index
    %c0_6 = arith.constant 0 : index
    %6 = vector.load %arg3[%c0_5, %c0_6] : memref<2x4xf32, #tpu.memory_space<vmem>>, vector<2x4xf32>
    tpu.vector_store %arg3[%c0_5, %c0_6], %5 {strides = array<i32>} : memref<2x4xf32, #tpu.memory_space<vmem>>, vector<2x4xf32>,
    return
  }
}

</mosaic_0001>

<bundles_post_ra>
// kernel: tpu_custom_call.1
= control target key start
LH: loop header
LB: loop body
LE: loop exit
PB: predicated region body
PF: predicated region fallthrough
CT: control target
= control target key end

     0   :  { %vm21_vm0 = vcmask 64512   ;;  %s125_s0 = inlined_call_operand.vmem [shape: f32[2,8], index: 0, kind: input, shape index: {}]   ;;  %s126_s1 = inlined_call_operand.vmem [shape: f32[8,4], index: 1, kind: input, shape index: {}]   ;;  %s127_s2 = inlined_call_operand.vmem [shape: f32[1,4], index: 2, kind: input, shape index: {}]   ;;  %s128_s3 = inlined_call_operand.hbm [shape: f32[2,4], index: 3, kind: output, shape index: {}]  }
   0x1   :  { %v16_v0 = vld [vmem:[%s126_s1] sm:$0xff] }
   0x2   :  { %v15_v1 = vld [vmem:[%s125_s0] sm:$0x3]  ;;  %40 = vmatpush.msra.mxu0 %v16_v0 }
   0x3   :  { %8 = vsyncpa [#allocation3], 0  ;;  %63 = vmatmul.msk.f32.vlgmr.msra.gmra.mxu0 %vm21_vm0, %v15_v1  ;;  %v65_v2 = vld [vmem:[%s127_s2] ss:$0 sm:$0xff]  ;;  %s92_s18 = smov [#allocation2]   ;;  %s54_s22 = sshll.u32 %s128_s3, 4  ;;  %s55_s22 = int_to_ptr.hbm [resolvable:$true] %s54_s22 }
   0x4   :  { %s52_s19 = sshll.u32 %s92_s18, 4  ;;  %vm45_vm1 = vcmask 25600   ;;  %s53_s19 = int_to_ptr.vmem [resolvable:$true] %s52_s19 }
  0x80   :  { %v42_v3 = vpop.f32.mrf.mxu0 }
  0x81   :  { %v43_v4 = vadd.f32 %v65_v2, %v42_v3 }
  0x83   :  { %46 = vst.msk [vmem:[#allocation2] sm:$0x3] %vm45_vm1, %v43_v4 }
  0x84   :  { %57 = dma.vmem_to_hbm [thread:$0]  %s53_s19, 32, %s55_s22, [#allocation3]  }
  0x85   :  { %90 = dma.done.wait [#allocation3], 32  }
  0x86   :  { %91 = vsyncadd [#allocation3], 4294967264 }
  0x87   :  { %62 = vsyncpa [#allocation3], 1 }

</bundles_post_ra>
